<compile_context>
chip_gen: v7x
topology: tpu7x:2x2x1
jax: 0.10.0
libtpu: 0.0.40
codegen_flags: <defaults>
</compile_context>

<pallas_src>
import jax
import jax.numpy as jnp
from jax.experimental import pallas as pl
from jax.experimental.pallas import tpu as pltpu

N_HIDDEN = 256  # hard-coded in Draft.__init__

# Rows of the packed "vecs" operand (all small vectors live in one [8, H] array).
_ROW_BH, _ROW_KVEC, _ROW_BFOLD, _ROW_B1, _ROW_BE, _ROW_B2 = range(6)


def _draft_kernel(x_ref, we_ref, wh_ref, wva_ref, w1_ref, w2_ref, vecs_ref, o_ref):
    f32 = jnp.float32
    bf16 = jnp.bfloat16
    n_nodes, tile, feat = x_ref.shape           # tile = samples per grid step
    emb_dim = we_ref.shape[1]

    # Unpack the packed small vectors (static slices of one VMEM tile).
    bh     = vecs_ref[_ROW_BH:_ROW_BH + 1, :]
    k_row  = vecs_ref[_ROW_KVEC:_ROW_KVEC + 1, :]
    b_fold = vecs_ref[_ROW_BFOLD:_ROW_BFOLD + 1, :]
    b1     = vecs_ref[_ROW_B1:_ROW_B1 + 1, :]
    be     = vecs_ref[_ROW_BE:_ROW_BE + 1, 0:emb_dim]
    b2     = vecs_ref[_ROW_B2:_ROW_B2 + 1, 0:feat]

    # Stack node slabs sublane-wise (tile % 8 == 0 -> tile-aligned concat) so
    # every matmul below runs once on [n_nodes*tile] rows (good MXU fill).
    x = jnp.concatenate([x_ref[n] for n in range(n_nodes)], axis=0)  # [N*tile, F]

    # emb -> relu(emb_to_hidden)
    e = jnp.dot(x, we_ref[...], preferred_element_type=f32) + be      # [N*T, E]
    nodes = jnp.maximum(
        jnp.dot(e.astype(bf16), wh_ref[...], preferred_element_type=f32) + bh,
        0.0)                                                          # [N*T, H]

    # ---- communicate round 1 ------------------------------------------------
    # w_j = softmax_j(nodes_j @ k_vec);  out = relu(sum_j w_j * (nodes_j@Wva) + b_fold)
    t = jnp.dot(nodes.astype(bf16), wva_ref[...], preferred_element_type=f32)  # [N*T, H]
    s = jnp.sum(nodes * k_row, axis=-1, keepdims=True)                          # [N*T, 1]
    s_n = [s[n * tile:(n + 1) * tile, :] for n in range(n_nodes)]               # N x [T, 1]
    m = s_n[0]
    for n in range(1, n_nodes):
        m = jnp.maximum(m, s_n[n])
    e_n = [jnp.exp(sn - m) for sn in s_n]
    denom = e_n[0]
    for n in range(1, n_nodes):
        denom = denom + e_n[n]
    inv = pl.reciprocal(denom, approx=True)                                     # [T, 1]
    acc = e_n[0] * t[0:tile, :]
    for n in range(1, n_nodes):
        acc = acc + e_n[n] * t[n * tile:(n + 1) * tile, :]
    h = jnp.maximum(acc * inv + b_fold, 0.0)                                    # [T, H]

    # ---- communicate rounds 2..5 ---------------------------------------------
    # All nodes are identical after round 1, so attention is uniform and each
    # further round is a plain GEMM on [T, H].
    for _ in range(4):
        h = jnp.maximum(
            jnp.dot(h.astype(bf16), wva_ref[...], preferred_element_type=f32)
            + b_fold, 0.0)

    # max over identical node rows is the identity -> straight to the head.
    h1 = jnp.maximum(
        jnp.dot(h.astype(bf16), w1_ref[...], preferred_element_type=f32) + b1,
        0.0)
    logits = jnp.dot(h1, w2_ref[...], preferred_element_type=f32) + b2          # [T, F]
    mx = jnp.max(logits, axis=-1, keepdims=True)
    lse = jnp.log(jnp.sum(jnp.exp(logits - mx), axis=-1, keepdims=True)) + mx
    o_ref[...] = (logits - lse).astype(o_ref.dtype)


def _round_up(v, m):
    return ((v + m - 1) // m) * m


def draft_forward(x, kparams, *, rows_per_block=None):
    """x: [P, N, B, F] (P independent problems) or [N, B, F]. Returns log-probs."""
    squeeze = x.ndim == 3
    if squeeze:
        x = x[None]
    P, n_nodes, batch, feat = x.shape
    we, wh, wva, w1, w2, vecs = kparams

    # The attention only mixes the node axis within a (problem, batch) sample,
    # so flatten samples onto one axis and tile it freely.
    samples = P * batch
    if rows_per_block is None:
        # ~256 LHS rows for the big [N*tile, H] x [H, H] matmul.
        rows_per_block = max(8, _round_up(max(1, 256 // n_nodes), 8))
    tile = max(8, _round_up(rows_per_block, 8))
    if samples > 8:
        tile = min(tile, _round_up(-(-samples // 2), 8))   # >=2 steps for v7x's 2 TCs
    tile = min(tile, _round_up(samples, 8))
    samples_pad = _round_up(samples, tile)

    # Node-major layout: [N, samples_pad, F]; zero-pad extra samples (ignored).
    xs = jnp.transpose(x, (1, 0, 2, 3)).reshape(n_nodes, samples, feat)
    xs = xs.astype(jnp.float32)
    if samples_pad != samples:
        xs = jnp.pad(xs, ((0, 0), (0, samples_pad - samples), (0, 0)))

    grid = samples_pad // tile
    const = lambda i: (0, 0)   # weights: same block every step -> VMEM-resident
    out = pl.pallas_call(
        _draft_kernel,
        out_shape=jax.ShapeDtypeStruct((samples_pad, feat), jnp.float32),
        grid=(grid,),
        in_specs=[
            pl.BlockSpec((n_nodes, tile, feat), lambda i: (0, i, 0)),
            pl.BlockSpec(we.shape, const),
            pl.BlockSpec(wh.shape, const),
            pl.BlockSpec(wva.shape, const),
            pl.BlockSpec(w1.shape, const),
            pl.BlockSpec(w2.shape, const),
            pl.BlockSpec(vecs.shape, const),
        ],
        out_specs=pl.BlockSpec((tile, feat), lambda i: (i, 0)),
        compiler_params=pltpu.CompilerParams(
            dimension_semantics=("parallel",)),   # split sample tiles across TCs
    )(xs, we, wh, wva, w1, w2, vecs)

    out = out[:samples].reshape(P, batch, feat)
    return out[0] if squeeze else out


def fold_params(raw):
    """Fold torch-style per-layer params into the compact kernel operand set."""
    (We, be, Wh, bh, Wq, bq, Wk, bk, Wv, bv, Wqk, bqk, Wa, ba, W1, b1, W2, b2) = raw
    H = Wq.shape[0]
    feat, emb_dim = We.shape

    # Softmax over key nodes is invariant to per-query additive constants, so
    # Q, bq, bk and bqk drop out entirely; only the key projection remains.
    k_vec = Wk @ Wqk[H:]                   # [H, 1]
    # Softmax rows sum to 1 -> V and A2N fold into one matrix + one bias.
    Wva = Wv @ Wa                          # [H, H]
    b_fold = bv @ Wa + ba                  # [1, H]

    vecs = jnp.zeros((8, H), jnp.float32)
    vecs = vecs.at[_ROW_BH, :].set(bh[0])
    vecs = vecs.at[_ROW_KVEC, :].set(k_vec[:, 0])
    vecs = vecs.at[_ROW_BFOLD, :].set(b_fold[0])
    vecs = vecs.at[_ROW_B1, :].set(b1[0])
    vecs = vecs.at[_ROW_BE, :emb_dim].set(be[0])
    vecs = vecs.at[_ROW_B2, :feat].set(b2[0])

    return (We.astype(jnp.float32),
            Wh.astype(jnp.bfloat16),
            Wva.astype(jnp.bfloat16),
            W1.astype(jnp.bfloat16),
            W2.astype(jnp.float32),
            vecs)


def draft_reference(x_nbf, raw):
    """Pure-JAX f32 reference of the original (unfolded) module forward."""
    (We, be, Wh, bh, Wq, bq, Wk, bk, Wv, bv, Wqk, bqk, Wa, ba, W1, b1, W2, b2) = raw
    H = Wq.shape[0]
    e = x_nbf @ We + be                                 # [N, B, E]
    nodes = jax.nn.relu(e @ Wh + bh)                    # [N, B, H]
    for _ in range(5):
        q = nodes @ Wq + bq
        k = nodes @ Wk + bk
        v = nodes @ Wv + bv
        sq = q @ Wqk[:H] + bqk                          # [N, B, 1]
        sk = k @ Wqk[H:]                                # [N, B, 1]
        scores = sq[:, None, :, 0] + sk[None, :, :, 0]  # [N_i, N_j, B]
        w = jax.nn.softmax(scores, axis=1)
        aggre = jnp.einsum('ijb,jbh->ibh', w, v)
        nodes = jax.nn.relu(aggre @ Wa + ba)
    agg = jnp.max(nodes, axis=0)                        # [B, H]
    h1 = jax.nn.relu(agg @ W1 + b1)
    return jax.nn.log_softmax(h1 @ W2 + b2, axis=1)


def _linear(key, fan_in, fan_out):
    """Deterministic synthetic params, stored as [in, out] (i.e. torch W.T)."""
    kw, kb = jax.random.split(key)
    bound = 1.0 / float(fan_in) ** 0.5
    w = jax.random.uniform(kw, (fan_in, fan_out), jnp.float32, -bound, bound)
    b = jax.random.uniform(kb, (1, fan_out), jnp.float32, -bound, bound)
    return w, b


if __name__ == "__main__":
    feature_dim, emb_dim = 8, 16
    n_nodes, batch, n_problems = 4, 2, 8

    key = jax.random.PRNGKey(0)
    keys = jax.random.split(key, 10)
    We, be = _linear(keys[0], feature_dim, emb_dim)      # emb
    Wh, bh = _linear(keys[1], emb_dim, N_HIDDEN)         # emb_to_hidden
    Wq, bq = _linear(keys[2], N_HIDDEN, N_HIDDEN)        # Q
    Wk, bk = _linear(keys[3], N_HIDDEN, N_HIDDEN)        # K
    Wv, bv = _linear(keys[4], N_HIDDEN, N_HIDDEN)        # V
    Wqk, bqk = _linear(keys[5], 2 * N_HIDDEN, 1)         # QK: Linear(512, 1)
    Wa, ba = _linear(keys[6], N_HIDDEN, N_HIDDEN)        # A2N
    W1, b1 = _linear(keys[7], N_HIDDEN, N_HIDDEN)        # fc1
    W2, b2 = _linear(keys[8], N_HIDDEN, feature_dim)     # fc2
    raw = (We, be, Wh, bh, Wq, bq, Wk, bk, Wv, bv, Wqk, bqk, Wa, ba, W1, b1, W2, b2)
    kparams = fold_params(raw)

    x = jax.random.normal(keys[9], (n_problems, n_nodes, batch, feature_dim),
                          jnp.float32)

    # Batched path: samples packed per grid step (>=2 steps for v7x's 2 TCs).
    out = draft_forward(x, kparams)
    jax.block_until_ready(out)
    assert out.shape == (n_problems, batch, feature_dim)
    assert out.dtype == jnp.float32

    # Single-problem path (matches the module's forward signature).
    out0 = draft_forward(x[0], kparams)
    jax.block_until_ready(out0)
    assert out0.shape == (batch, feature_dim)

    # Validate against a pure-JAX f32 reference of the unfolded module
    # (bf16 weights + approx reciprocal give small, bounded differences).
    ref = jax.vmap(lambda xp: draft_reference(xp, raw))(x)
    err = float(jnp.max(jnp.abs(out - ref)))
    err0 = float(jnp.max(jnp.abs(out0 - ref[0])))
    assert err < 5e-2 and err0 < 5e-2, f"max abs error {err} / {err0}"

    # TODO(synk): training-side members (RMSprop opt, loss, learn_once, forward_pr,
    # save/load) are not part of the forward pass and are intentionally not ported.
    print("KERNEL_OK")
</pallas_src>

<mosaic_0001>
module attributes {stable_mosaic.version = 11 : i64} {
  func.func @_draft_kernel(%arg0: i32, %arg1: memref<4x8x8xf32, #tpu.memory_space<vmem>>, %arg2: memref<8x16xf32, #tpu.memory_space<vmem>>, %arg3: memref<16x256xbf16, #tpu.memory_space<vmem>>, %arg4: memref<256x256xbf16, #tpu.memory_space<vmem>>, %arg5: memref<256x256xbf16, #tpu.memory_space<vmem>>, %arg6: memref<256x8xf32, #tpu.memory_space<vmem>>, %arg7: memref<8x256xf32, #tpu.memory_space<vmem>>, %arg8: memref<8x8xf32, #tpu.memory_space<vmem>>) attributes {dimension_semantics = [#tpu.dimension_semantics<parallel>], iteration_bounds = array<i64: 2>, scalar_prefetch = 0 : i64, scratch_operands = 0 : i64, tpu.core_type = #tpu.core_type<tc>, window_params = [{transform_indices = @transform_0, window_bounds = array<i64: 4, 8, 8>}, {pipeline_mode = #tpu.pipeline_mode<synchronous>, transform_indices = @transform_1, window_bounds = array<i64: 8, 16>}, {pipeline_mode = #tpu.pipeline_mode<synchronous>, transform_indices = @transform_2, window_bounds = array<i64: 16, 256>}, {pipeline_mode = #tpu.pipeline_mode<synchronous>, transform_indices = @transform_3, window_bounds = array<i64: 256, 256>}, {pipeline_mode = #tpu.pipeline_mode<synchronous>, transform_indices = @transform_4, window_bounds = array<i64: 256, 256>}, {pipeline_mode = #tpu.pipeline_mode<synchronous>, transform_indices = @transform_5, window_bounds = array<i64: 256, 8>}, {pipeline_mode = #tpu.pipeline_mode<synchronous>, transform_indices = @transform_6, window_bounds = array<i64: 8, 256>}, {transform_indices = @transform_7, window_bounds = array<i64: 8, 8>}]} {
    %c0 = arith.constant 0 : index
    %c0_0 = arith.constant 0 : index
    %0 = vector.load %arg7[%c0, %c0_0] : memref<8x256xf32, #tpu.memory_space<vmem>>, vector<1x256xf32>
    %c1 = arith.constant 1 : index
    %c0_1 = arith.constant 0 : index
    %1 = vector.load %arg7[%c1, %c0_1] : memref<8x256xf32, #tpu.memory_space<vmem>>, vector<1x256xf32>
    %c2 = arith.constant 2 : index
    %c0_2 = arith.constant 0 : index
    %2 = vector.load %arg7[%c2, %c0_2] : memref<8x256xf32, #tpu.memory_space<vmem>>, vector<1x256xf32>
    %c3 = arith.constant 3 : index
    %c0_3 = arith.constant 0 : index
    %3 = vector.load %arg7[%c3, %c0_3] : memref<8x256xf32, #tpu.memory_space<vmem>>, vector<1x256xf32>
    %c4 = arith.constant 4 : index
    %c0_4 = arith.constant 0 : index
    %4 = vector.load %arg7[%c4, %c0_4] : memref<8x256xf32, #tpu.memory_space<vmem>>, vector<1x16xf32>
    %c5 = arith.constant 5 : index
    %c0_5 = arith.constant 0 : index
    %5 = vector.load %arg7[%c5, %c0_5] : memref<8x256xf32, #tpu.memory_space<vmem>>, vector<1x8xf32>
    %c0_6 = arith.constant 0 : index
    %c0_7 = arith.constant 0 : index
    %c0_8 = arith.constant 0 : index
    %6 = vector.load %arg1[%c0_6, %c0_7, %c0_8] : memref<4x8x8xf32, #tpu.memory_space<vmem>>, vector<1x8x8xf32>
    %7 = vector.shape_cast %6 : vector<1x8x8xf32> to vector<8x8xf32>
    %c1_9 = arith.constant 1 : index
    %c0_10 = arith.constant 0 : index
    %c0_11 = arith.constant 0 : index
    %8 = vector.load %arg1[%c1_9, %c0_10, %c0_11] : memref<4x8x8xf32, #tpu.memory_space<vmem>>, vector<1x8x8xf32>
    %9 = vector.shape_cast %8 : vector<1x8x8xf32> to vector<8x8xf32>
    %c2_12 = arith.constant 2 : index
    %c0_13 = arith.constant 0 : index
    %c0_14 = arith.constant 0 : index
    %10 = vector.load %arg1[%c2_12, %c0_13, %c0_14] : memref<4x8x8xf32, #tpu.memory_space<vmem>>, vector<1x8x8xf32>
    %11 = vector.shape_cast %10 : vector<1x8x8xf32> to vector<8x8xf32>
    %c3_15 = arith.constant 3 : index
    %c0_16 = arith.constant 0 : index
    %c0_17 = arith.constant 0 : index
    %12 = vector.load %arg1[%c3_15, %c0_16, %c0_17] : memref<4x8x8xf32, #tpu.memory_space<vmem>>, vector<1x8x8xf32>
    %13 = vector.shape_cast %12 : vector<1x8x8xf32> to vector<8x8xf32>
    %14 = tpu.concatenate %7, %9, %11, %13 in 0 : vector<8x8xf32>, vector<8x8xf32>, vector<8x8xf32>, vector<8x8xf32> -> vector<32x8xf32>
    %c0_18 = arith.constant 0 : index
    %c0_19 = arith.constant 0 : index
    %15 = vector.load %arg2[%c0_18, %c0_19] : memref<8x16xf32, #tpu.memory_space<vmem>>, vector<8x16xf32>
    %cst = arith.constant dense<0.000000e+00> : vector<32x16xf32>
    %16 = tpu.matmul %14, %15, %cst {dimension_numbers = #tpu.dot_dimension_numbers<[1], [0], [0], [1], [0, 0, 1, 1], [], []>} : vector<32x8xf32>, vector<8x16xf32>, vector<32x16xf32> -> vector<32x16xf32>
    %17 = vector.broadcast %4 : vector<1x16xf32> to vector<32x16xf32>
    %18 = arith.addf %16, %17 : vector<32x16xf32>
    %19 = arith.truncf %18 : vector<32x16xf32> to vector<32x16xbf16>
    %c0_20 = arith.constant 0 : index
    %c0_21 = arith.constant 0 : index
    %20 = vector.load %arg3[%c0_20, %c0_21] : memref<16x256xbf16, #tpu.memory_space<vmem>>, vector<16x256xbf16>
    %cst_22 = arith.constant dense<0.000000e+00> : vector<32x256xf32>
    %21 = tpu.matmul %19, %20, %cst_22 {dimension_numbers = #tpu.dot_dimension_numbers<[1], [0], [0], [1], [0, 0, 1, 1], [], []>} : vector<32x16xbf16>, vector<16x256xbf16>, vector<32x256xf32> -> vector<32x256xf32>
    %22 = vector.broadcast %0 : vector<1x256xf32> to vector<32x256xf32>
    %23 = arith.addf %21, %22 : vector<32x256xf32>
    %cst_23 = arith.constant 0.000000e+00 : f32
    %24 = vector.broadcast %cst_23 : f32 to vector<32x256xf32>
    %25 = arith.maximumf %23, %24 : vector<32x256xf32>
    %26 = arith.truncf %25 : vector<32x256xf32> to vector<32x256xbf16>
    %c0_24 = arith.constant 0 : index
    %c0_25 = arith.constant 0 : index
    %27 = vector.load %arg4[%c0_24, %c0_25] : memref<256x256xbf16, #tpu.memory_space<vmem>>, vector<256x256xbf16>
    %cst_26 = arith.constant dense<0.000000e+00> : vector<32x256xf32>
    %28 = tpu.matmul %26, %27, %cst_26 {dimension_numbers = #tpu.dot_dimension_numbers<[1], [0], [0], [1], [0, 0, 1, 1], [], []>} : vector<32x256xbf16>, vector<256x256xbf16>, vector<32x256xf32> -> vector<32x256xf32>
    %29 = vector.broadcast %1 : vector<1x256xf32> to vector<32x256xf32>
    %30 = arith.mulf %25, %29 : vector<32x256xf32>
    %cst_27 = arith.constant dense<0.000000e+00> : vector<32xf32>
    %31 = vector.multi_reduction <add>, %30, %cst_27 [1] : vector<32x256xf32> to vector<32xf32>
    %32 = vector.shape_cast %31 : vector<32xf32> to vector<32x1xf32>
    %33 = vector.extract_strided_slice %32 {offsets = [0, 0], sizes = [8, 1], strides = [1, 1]} : vector<32x1xf32> to vector<8x1xf32>
    %34 = vector.extract_strided_slice %32 {offsets = [8, 0], sizes = [8, 1], strides = [1, 1]} : vector<32x1xf32> to vector<8x1xf32>
    %35 = vector.extract_strided_slice %32 {offsets = [16, 0], sizes = [8, 1], strides = [1, 1]} : vector<32x1xf32> to vector<8x1xf32>
    %36 = vector.extract_strided_slice %32 {offsets = [24, 0], sizes = [8, 1], strides = [1, 1]} : vector<32x1xf32> to vector<8x1xf32>
    %37 = arith.maximumf %33, %34 : vector<8x1xf32>
    %38 = arith.maximumf %37, %35 : vector<8x1xf32>
    %39 = arith.maximumf %38, %36 : vector<8x1xf32>
    %40 = arith.subf %33, %39 : vector<8x1xf32>
    %41 = math.exp %40 : vector<8x1xf32>
    %42 = arith.subf %34, %39 : vector<8x1xf32>
    %43 = math.exp %42 : vector<8x1xf32>
    %44 = arith.subf %35, %39 : vector<8x1xf32>
    %45 = math.exp %44 : vector<8x1xf32>
    %46 = arith.subf %36, %39 : vector<8x1xf32>
    %47 = math.exp %46 : vector<8x1xf32>
    %48 = arith.addf %41, %43 : vector<8x1xf32>
    %49 = arith.addf %48, %45 : vector<8x1xf32>
    %50 = arith.addf %49, %47 : vector<8x1xf32>
    %51 = tpu.reciprocal %50 {approx = true} : vector<8x1xf32> -> vector<8x1xf32>
    %52 = vector.extract_strided_slice %28 {offsets = [0, 0], sizes = [8, 256], strides = [1, 1]} : vector<32x256xf32> to vector<8x256xf32>
    %53 = vector.broadcast %41 : vector<8x1xf32> to vector<8x256xf32>
    %54 = arith.mulf %53, %52 : vector<8x256xf32>
    %55 = vector.extract_strided_slice %28 {offsets = [8, 0], sizes = [8, 256], strides = [1, 1]} : vector<32x256xf32> to vector<8x256xf32>
    %56 = vector.broadcast %43 : vector<8x1xf32> to vector<8x256xf32>
    %57 = arith.mulf %56, %55 : vector<8x256xf32>
    %58 = arith.addf %54, %57 : vector<8x256xf32>
    %59 = vector.extract_strided_slice %28 {offsets = [16, 0], sizes = [8, 256], strides = [1, 1]} : vector<32x256xf32> to vector<8x256xf32>
    %60 = vector.broadcast %45 : vector<8x1xf32> to vector<8x256xf32>
    %61 = arith.mulf %60, %59 : vector<8x256xf32>
    %62 = arith.addf %58, %61 : vector<8x256xf32>
    %63 = vector.extract_strided_slice %28 {offsets = [24, 0], sizes = [8, 256], strides = [1, 1]} : vector<32x256xf32> to vector<8x256xf32>
    %64 = vector.broadcast %47 : vector<8x1xf32> to vector<8x256xf32>
    %65 = arith.mulf %64, %63 : vector<8x256xf32>
    %66 = arith.addf %62, %65 : vector<8x256xf32>
    %67 = vector.broadcast %51 : vector<8x1xf32> to vector<8x256xf32>
    %68 = arith.mulf %66, %67 : vector<8x256xf32>
    %69 = vector.broadcast %2 : vector<1x256xf32> to vector<8x256xf32>
    %70 = arith.addf %68, %69 : vector<8x256xf32>
    %cst_28 = arith.constant 0.000000e+00 : f32
    %71 = vector.broadcast %cst_28 : f32 to vector<8x256xf32>
    %72 = arith.maximumf %70, %71 : vector<8x256xf32>
    %73 = arith.truncf %72 : vector<8x256xf32> to vector<8x256xbf16>
    %c0_29 = arith.constant 0 : index
    %c0_30 = arith.constant 0 : index
    %74 = vector.load %arg4[%c0_29, %c0_30] : memref<256x256xbf16, #tpu.memory_space<vmem>>, vector<256x256xbf16>
    %cst_31 = arith.constant dense<0.000000e+00> : vector<8x256xf32>
    %75 = tpu.matmul %73, %74, %cst_31 {dimension_numbers = #tpu.dot_dimension_numbers<[1], [0], [0], [1], [0, 0, 1, 1], [], []>} : vector<8x256xbf16>, vector<256x256xbf16>, vector<8x256xf32> -> vector<8x256xf32>
    %76 = vector.broadcast %2 : vector<1x256xf32> to vector<8x256xf32>
    %77 = arith.addf %75, %76 : vector<8x256xf32>
    %cst_32 = arith.constant 0.000000e+00 : f32
    %78 = vector.broadcast %cst_32 : f32 to vector<8x256xf32>
    %79 = arith.maximumf %77, %78 : vector<8x256xf32>
    %80 = arith.truncf %79 : vector<8x256xf32> to vector<8x256xbf16>
    %c0_33 = arith.constant 0 : index
    %c0_34 = arith.constant 0 : index
    %81 = vector.load %arg4[%c0_33, %c0_34] : memref<256x256xbf16, #tpu.memory_space<vmem>>, vector<256x256xbf16>
    %cst_35 = arith.constant dense<0.000000e+00> : vector<8x256xf32>
    %82 = tpu.matmul %80, %81, %cst_35 {dimension_numbers = #tpu.dot_dimension_numbers<[1], [0], [0], [1], [0, 0, 1, 1], [], []>} : vector<8x256xbf16>, vector<256x256xbf16>, vector<8x256xf32> -> vector<8x256xf32>
    %83 = vector.broadcast %2 : vector<1x256xf32> to vector<8x256xf32>
    %84 = arith.addf %82, %83 : vector<8x256xf32>
    %cst_36 = arith.constant 0.000000e+00 : f32
    %85 = vector.broadcast %cst_36 : f32 to vector<8x256xf32>
    %86 = arith.maximumf %84, %85 : vector<8x256xf32>
    %87 = arith.truncf %86 : vector<8x256xf32> to vector<8x256xbf16>
    %c0_37 = arith.constant 0 : index
    %c0_38 = arith.constant 0 : index
    %88 = vector.load %arg4[%c0_37, %c0_38] : memref<256x256xbf16, #tpu.memory_space<vmem>>, vector<256x256xbf16>
    %cst_39 = arith.constant dense<0.000000e+00> : vector<8x256xf32>
    %89 = tpu.matmul %87, %88, %cst_39 {dimension_numbers = #tpu.dot_dimension_numbers<[1], [0], [0], [1], [0, 0, 1, 1], [], []>} : vector<8x256xbf16>, vector<256x256xbf16>, vector<8x256xf32> -> vector<8x256xf32>
    %90 = vector.broadcast %2 : vector<1x256xf32> to vector<8x256xf32>
    %91 = arith.addf %89, %90 : vector<8x256xf32>
    %cst_40 = arith.constant 0.000000e+00 : f32
    %92 = vector.broadcast %cst_40 : f32 to vector<8x256xf32>
    %93 = arith.maximumf %91, %92 : vector<8x256xf32>
    %94 = arith.truncf %93 : vector<8x256xf32> to vector<8x256xbf16>
    %c0_41 = arith.constant 0 : index
    %c0_42 = arith.constant 0 : index
    %95 = vector.load %arg4[%c0_41, %c0_42] : memref<256x256xbf16, #tpu.memory_space<vmem>>, vector<256x256xbf16>
    %cst_43 = arith.constant dense<0.000000e+00> : vector<8x256xf32>
    %96 = tpu.matmul %94, %95, %cst_43 {dimension_numbers = #tpu.dot_dimension_numbers<[1], [0], [0], [1], [0, 0, 1, 1], [], []>} : vector<8x256xbf16>, vector<256x256xbf16>, vector<8x256xf32> -> vector<8x256xf32>
    %97 = vector.broadcast %2 : vector<1x256xf32> to vector<8x256xf32>
    %98 = arith.addf %96, %97 : vector<8x256xf32>
    %cst_44 = arith.constant 0.000000e+00 : f32
    %99 = vector.broadcast %cst_44 : f32 to vector<8x256xf32>
    %100 = arith.maximumf %98, %99 : vector<8x256xf32>
    %101 = arith.truncf %100 : vector<8x256xf32> to vector<8x256xbf16>
    %c0_45 = arith.constant 0 : index
    %c0_46 = arith.constant 0 : index
    %102 = vector.load %arg5[%c0_45, %c0_46] : memref<256x256xbf16, #tpu.memory_space<vmem>>, vector<256x256xbf16>
    %cst_47 = arith.constant dense<0.000000e+00> : vector<8x256xf32>
    %103 = tpu.matmul %101, %102, %cst_47 {dimension_numbers = #tpu.dot_dimension_numbers<[1], [0], [0], [1], [0, 0, 1, 1], [], []>} : vector<8x256xbf16>, vector<256x256xbf16>, vector<8x256xf32> -> vector<8x256xf32>
    %104 = vector.broadcast %3 : vector<1x256xf32> to vector<8x256xf32>
    %105 = arith.addf %103, %104 : vector<8x256xf32>
    %cst_48 = arith.constant 0.000000e+00 : f32
    %106 = vector.broadcast %cst_48 : f32 to vector<8x256xf32>
    %107 = arith.maximumf %105, %106 : vector<8x256xf32>
    %c0_49 = arith.constant 0 : index
    %c0_50 = arith.constant 0 : index
    %108 = vector.load %arg6[%c0_49, %c0_50] : memref<256x8xf32, #tpu.memory_space<vmem>>, vector<256x8xf32>
    %cst_51 = arith.constant dense<0.000000e+00> : vector<8x8xf32>
    %109 = tpu.matmul %107, %108, %cst_51 {dimension_numbers = #tpu.dot_dimension_numbers<[1], [0], [0], [1], [0, 0, 1, 1], [], []>} : vector<8x256xf32>, vector<256x8xf32>, vector<8x8xf32> -> vector<8x8xf32>
    %110 = vector.broadcast %5 : vector<1x8xf32> to vector<8x8xf32>
    %111 = arith.addf %109, %110 : vector<8x8xf32>
    %cst_52 = arith.constant dense<0xFF800000> : vector<8xf32>
    %112 = vector.multi_reduction <maximumf>, %111, %cst_52 [1] : vector<8x8xf32> to vector<8xf32>
    %113 = vector.shape_cast %112 : vector<8xf32> to vector<8x1xf32>
    %114 = vector.broadcast %113 : vector<8x1xf32> to vector<8x8xf32>
    %115 = arith.subf %111, %114 : vector<8x8xf32>
    %116 = math.exp %115 : vector<8x8xf32>
    %cst_53 = arith.constant dense<0.000000e+00> : vector<8xf32>
    %117 = vector.multi_reduction <add>, %116, %cst_53 [1] : vector<8x8xf32> to vector<8xf32>
    %118 = vector.shape_cast %117 : vector<8xf32> to vector<8x1xf32>
    %119 = math.log %118 : vector<8x1xf32>
    %120 = arith.addf %119, %113 : vector<8x1xf32>
    %121 = vector.broadcast %120 : vector<8x1xf32> to vector<8x8xf32>
    %122 = arith.subf %111, %121 : vector<8x8xf32>
    %c0_54 = arith.constant 0 : index
    %c0_55 = arith.constant 0 : index
    %123 = vector.load %arg8[%c0_54, %c0_55] : memref<8x8xf32, #tpu.memory_space<vmem>>, vector<8x8xf32>
    tpu.vector_store %arg8[%c0_54, %c0_55], %122 {strides = array<i32>} : memref<8x8xf32, #tpu.memory_space<vmem>>, vector<8x8xf32>,
    return
  }
  func.func @transform_0(%arg0: i32) -> (i32, i32, i32) {
    %c0_i32 = arith.constant 0 : i32
    %c0_i32_0 = arith.constant 0 : i32
    %c0_i32_1 = arith.constant 0 : i32
    return %c0_i32, %arg0, %c0_i32_0 : i32, i32, i32
  }
  func.func @transform_1(%arg0: i32) -> (i32, i32) {
    %c0_i32 = arith.constant 0 : i32
    %c0_i32_0 = arith.constant 0 : i32
    %c0_i32_1 = arith.constant 0 : i32
    return %c0_i32, %c0_i32_0 : i32, i32
  }
  func.func @transform_2(%arg0: i32) -> (i32, i32) {
    %c0_i32 = arith.constant 0 : i32
    %c0_i32_0 = arith.constant 0 : i32
    %c0_i32_1 = arith.constant 0 : i32
    return %c0_i32, %c0_i32_0 : i32, i32
  }
  func.func @transform_3(%arg0: i32) -> (i32, i32) {
    %c0_i32 = arith.constant 0 : i32
    %c0_i32_0 = arith.constant 0 : i32
    %c0_i32_1 = arith.constant 0 : i32
    return %c0_i32, %c0_i32_0 : i32, i32
  }
  func.func @transform_4(%arg0: i32) -> (i32, i32) {
    %c0_i32 = arith.constant 0 : i32
    %c0_i32_0 = arith.constant 0 : i32
    %c0_i32_1 = arith.constant 0 : i32
    return %c0_i32, %c0_i32_0 : i32, i32
  }
  func.func @transform_5(%arg0: i32) -> (i32, i32) {
    %c0_i32 = arith.constant 0 : i32
    %c0_i32_0 = arith.constant 0 : i32
    %c0_i32_1 = arith.constant 0 : i32
    return %c0_i32, %c0_i32_0 : i32, i32
  }
  func.func @transform_6(%arg0: i32) -> (i32, i32) {
    %c0_i32 = arith.constant 0 : i32
    %c0_i32_0 = arith.constant 0 : i32
    %c0_i32_1 = arith.constant 0 : i32
    return %c0_i32, %c0_i32_0 : i32, i32
  }
  func.func @transform_7(%arg0: i32) -> (i32, i32) {
    %c0_i32 = arith.constant 0 : i32
    %c0_i32_0 = arith.constant 0 : i32
    return %arg0, %c0_i32 : i32, i32
  }
}

</mosaic_0001>

<bundles_post_ra>
// kernel: tpu_custom_call.1
= control target key start
LH: loop header
LB: loop body
LE: loop exit
PB: predicated region body
PF: predicated region fallthrough
CT: control target
= control target key end

     0   :  { %12 = vsyncpa [#allocation4], 0  ;;  %s1914_s24 = smov 0   ;;  %s1916_s25 = smov 0   ;;  %s2487_s0 = inlined_call_operand.vmem [shape: f32[4,16,8], index: 0, kind: input, shape index: {}]   ;;  %s2488_s1 = inlined_call_operand.vmem [shape: f32[8,16], index: 1, kind: input, shape index: {}]   ;;  %s2489_s2 = inlined_call_operand.vmem [shape: bf16[16,256], index: 2, kind: input, shape index: {}]   ;;  %s2490_s3 = inlined_call_operand.vmem [shape: bf16[256,256], index: 3, kind: input, shape index: {}]   ;;  %s2491_s4 = inlined_call_operand.hbm [shape: bf16[256,256], index: 4, kind: input, shape index: {}]   ;;  %s2492_s5 = inlined_call_operand.vmem [shape: f32[256,8], index: 5, kind: input, shape index: {}]   ;;  %s2493_s6 = inlined_call_operand.vmem [shape: f32[8,256], index: 6, kind: input, shape index: {}]   ;;  %s2494_s7 = inlined_call_operand.vmem [shape: f32[16,8], index: 7, kind: output, shape index: {}]  }
   0x1   :  { %s1918_s26 = smov 0  }
   0x2 LB: > { %s1930_s27 = sadd.s32 4294967295, %s1868_s26   ;;  %s1933_s28 = sadd.s32 1, %s1868_s26   ;;  %s1868_s26 = sphi %s1918_s26, %s2506_s26   ;;  %s1864_s25 = sphi %s1916_s25, %s2505_s25   ;;  %s1860_s24 = sphi %s1914_s24, %s2504_s24  }
   0x3   : > { %s22_s29 = ssub.s32 %s1868_s26, %s1933_s28  ;;  %s25_s30 = sadd.s32 1, %s1864_s25 }
   0x4   : > { %p23_p0 = scmp.eq.s32.totalorder %s22_s29, 0  ;;  %p32_p1 = scmp.ne.s32.totalorder %s1864_s25, %s1860_s24 }
   0x5   : > { %p33_p2 = scmp.eq.s32.totalorder %s1868_s26, 0  ;;  %p1494_p3 = scmp.ge.s32.totalorder %s1868_s26, 1 }
   0x6   : > { %s1943_s8 = scalar_select %p23_p0, %s1864_s25, %s25_s30  }
   0x7   : > { %p1945_p4 = por %p33_p2, %p32_p1  ;;  %p201_p5 = scmp.lt.s32.totalorder %s1868_s26, 3 }
   0x8   : > { %p2495_p6 = scmp.eq.s32.totalorder %s1930_s27, 0  ;;  %s1870_s11 = smov [#allocation3]  }
   0x9   : > { %s2497_s9 = scalar_select %p1945_p4, 1, 0 }
   0xa   : > { %p1951_p7 = pnand %p1494_p3, %p201_p5  ;;  %s222_s12 = sshll.u32 %s1870_s11, 4  ;;  %s223_s12 = int_to_ptr.vmem [resolvable:$true] %s222_s12 }
   0xb   : > { %s1814_s16 = scalar_lea.hbm %s2491_s4, 4096 }
   0xc   : > { %s2498_s10 = scalar_select %p1951_p7, 1, 0 }
   0xd   : > { %p1667_p8 = pneg %p1951_p7  ;;  %p1815_p10 = scmp.ne.s32.totalorder %s2491_s4, %s1814_s16 }
   0xe   : > { %p1821_p0 = scmp.lt.u32.totalorder %s1814_s16, %s2491_s4 }
   0xf   : > { %p1959_p9 = pnand %p2495_p6, %p1667_p8 }
  0x11   : > { %p1816_p11 = pneg %p1959_p9 }
  0x13   : > { %p1817_p12 = pnand %p1816_p11, %p1815_p10 }
  0x15   : > { %p1818_p13 = pneg %p1817_p12 }
  0x17   : > { %p1823_p1 = pnand %p1821_p0, %p1818_p13 }
  0x19   : > { %1826 = shalt.err (!%p1823_p1)
}
  0x1a   : > { %s1827_s21 = scalar_lea.vmem %s223_s12, 4096  ;;  %p1835_p8 = scmp.lt.s32.totalorder %s223_s12, %s223_s12 }
  0x1b   : > { %p1828_p2 = scmp.ne.s32.totalorder %s223_s12, %s1827_s21  ;;  %p1836_p6 = scmp.lt.s32.totalorder %s1827_s21, %s1827_s21 }
  0x1d   : > { %p1830_p3 = pnand %p1828_p2, %p1816_p11  ;;  %p1837_p7 = por %p1836_p6, %p1835_p8 }
  0x1f   : > { %p1831_p5 = pneg %p1830_p3 }
  0x21   : > { %p1838_p4 = pnand %p1837_p7, %p1831_p5 }
  0x23   : > { %1841 = shalt.err (!%p1838_p4)
}
  0x24   : > { %s1871_s22 = smov 128   ;;  %s1872_s23 = smov 8  }
  0x25   : > { %1670 = dma.hbm_to_vmem [thread:$0]  (!%p1959_p9), %s2491_s4, 4096, %s223_s12, [#allocation4], %s1871_s22, %s1871_s22, %s1872_s23  }
  0x26   : > { %p1496_p10 = scmp.ge.s32.totalorder %s1868_s26, 2 }
  0x27   : > { %p2500_p12 = scmp.ne.s32.totalorder (!%p1496_p10), %s2497_s9, 0 }
  0x28   : > { %238 = sbr.rel (%p1496_p10) target bundleno = 54 (0x36), region = 40 }
  0x2f   : > { %241 = sbr.rel (!%p2500_p12) target bundleno = 54 (0x36), region = 44  ;;  %s243_s11 = sand.u32 (%p2500_p12), 1, %s1864_s25  }
  0x30   : > { %s1498_s14 = sshll.u32 (%p2500_p12), %s1868_s26, 3  ;;  %s1497_s15 = sshll.u32 (%p2500_p12), %s243_s11, 5 }
  0x31   : > { %s247_s18 = scalar_lea.vmem (%p2500_p12), %s2487_s0, %s1498_s14  ;;  %s245_s13 = scalar_lea.vmem (%p2500_p12), [#allocation2], %s1497_s15 }
  0x32   : > { %v281_v0 = vld [vmem:[%s247_s18] sm:$0xff] (%p2500_p12)  ;;  %v283_v1 = vld [vmem:[%s247_s18 + $0x10] sm:$0xff] (%p2500_p12) }
  0x33   : > { %v285_v2 = vld [vmem:[%s247_s18 + $0x20] sm:$0xff] (%p2500_p12)  ;;  %282 = vst [vmem:[%s245_s13] sm:$0xff] (%p2500_p12), %v281_v0  ;;  %284 = vst [vmem:[%s245_s13 + $0x8] sm:$0xff] (%p2500_p12), %v283_v1  ;;  %v287_v3 = vld [vmem:[%s247_s18 + $0x30] sm:$0xff] (%p2500_p12) }
  0x34   : > { %286 = vst [vmem:[%s245_s13 + $0x10] sm:$0xff] (%p2500_p12), %v285_v2  ;;  %288 = vst [vmem:[%s245_s13 + $0x18] sm:$0xff] (%p2500_p12), %v287_v3 }
  0x36 PF: > { %p2501_p4 = scmp.ne.s32.totalorder %s2498_s10, 0 }
  0x37   : > { %s300_s26 = sand.u32 (!%p2501_p4), 1, %s1860_s24   ;;  %p2502_p6 = scmp.eq.s32.totalorder (!%p2501_p4), %s1930_s27, 0 }
  0x38   : > { %297 = sbr.rel (%p2501_p4) target bundleno = 2376 (0x948), region = 82  ;;  %s1500_s9 = sshll.u32 (!%p2501_p4), %s300_s26, 5 }
  0x39   : > { %s302_s12 = scalar_lea.vmem (!%p2501_p4), [#allocation2], %s1500_s9 }
  0x3f   : > { %1855 = dma.done.wait (%p2502_p6), [#allocation4], 4096   ;;  %p2503_p7 = pmov %p2502_p6 }
  0x40   : > { %vm356_vm0 = vcmask 64512   ;;  %v355_v4 = vld [vmem:[%s2488_s1] sm:$0xff]  ;;  %v1506_v6 = vld [vmem:[%s302_s12 + $0x8] sm:$0xff]  ;;  %v1507_v7 = vld [vmem:[%s302_s12 + $0x10] sm:$0xff]  ;;  %v1873_v11 = vmov 0   ;;  %vm479_vm1 = vcmask 130048   ;;  %v459_v55 = vlaneseq }
  0x41   : > { %1857 = vsyncadd (%p2503_p7), [#allocation4], 4294963200  ;;  %v348_v5 = vld [vmem:[%s302_s12] sm:$0xff]  ;;  %1623 = vmatprep.subr.mxu1 %v355_v4  ;;  %v1508_v8 = vld [vmem:[%s302_s12 + $0x18] sm:$0xff]  ;;  %p334_p9 = scmp.lt.s32.totalorder %s1930_s27, 1 }
  0x42   : > { %1625 = vmatprep.mubr.msk.f32.mxu1 %vm356_vm0, %v348_v5  ;;  %1624 = vmatpush3.msra.mxu1 %v355_v4  ;;  %v1701_v9 = vld [vmem:[%s2489_s2] ss:$8 sps:$4 sm:$0xff]   ;;  %v1703_v10 = vld [vmem:[%s2489_s2 + $0x4] ss:$8 sps:$4 sm:$0xff]   ;;  %v2021_v14 = vld [vmem:[%s2490_s3 + $0x14] ss:$8 sps:$4 sm:$0xff]  }
  0x43   : > { %1626 = vmatmul.mubr.msk.f32.vlgmr.msra.gmra.mrb[0].mxu1 %vm356_vm0, %v1506_v6  ;;  %486 = vmatprep.subr.bf16.mxu1 %v1703_v10  ;;  %v2011_v12 = vld [vmem:[%s2490_s3 + $0x4] ss:$8 sps:$4 sm:$0xff]   ;;  %v2016_v13 = vld [vmem:[%s2490_s3] ss:$8 sps:$4 sm:$0xff]   ;;  %v2029_v15 = vld [vmem:[%s2490_s3 + $0x10] ss:$8 sps:$4 sm:$0xff]  }
  0x44   : > { %1628 = vmatprep.mubr.msk.f32.mxu1 %vm356_vm0, %v1507_v7  ;;  %487 = vmatpush1.bf16.msra.mxu1 %v1701_v9  ;;  %v2035_v16 = vld [vmem:[%s2490_s3 + $0x24] ss:$8 sps:$4 sm:$0xff]   ;;  %v2041_v17 = vld [vmem:[%s2490_s3 + $0x20] ss:$8 sps:$4 sm:$0xff]   ;;  %v2047_v18 = vld [vmem:[%s2490_s3 + $0x34] ss:$8 sps:$4 sm:$0xff]  }
  0x45   : > { %743 = vmatprep.subr.bf16.mxu0 %v2011_v12  ;;  %879 = vmatprep.subr.bf16.mxu1 %v2011_v12  ;;  %v2053_v19 = vld [vmem:[%s2490_s3 + $0x30] ss:$8 sps:$4 sm:$0xff]   ;;  %v2059_v20 = vld [vmem:[%s2490_s3 + $0x44] ss:$8 sps:$4 sm:$0xff]   ;;  %v2065_v21 = vld [vmem:[%s2490_s3 + $0x40] ss:$8 sps:$4 sm:$0xff]  }
  0x46   : > { %744 = vmatpush1.bf16.msra.mxu0 %v2016_v13  ;;  %v2071_v22 = vld [vmem:[%s2490_s3 + $0x54] ss:$8 sps:$4 sm:$0xff]   ;;  %v2077_v23 = vld [vmem:[%s2490_s3 + $0x50] ss:$8 sps:$4 sm:$0xff]   ;;  %v2083_v24 = vld [vmem:[%s2490_s3 + $0x64] ss:$8 sps:$4 sm:$0xff]  }
  0x47   : > { %1629 = vmatmul.mubr.msk.f32.gmra.mrb[2].mxu1 %vm356_vm0, %v1508_v8  ;;  %745 = vmatprep.subr.bf16.mxu0 %v2021_v14  ;;  %v2089_v25 = vld [vmem:[%s2490_s3 + $0x60] ss:$8 sps:$4 sm:$0xff]   ;;  %v2095_v26 = vld [vmem:[%s2490_s3 + $0x74] ss:$8 sps:$4 sm:$0xff]   ;;  %v2101_v27 = vld [vmem:[%s2490_s3 + $0x70] ss:$8 sps:$4 sm:$0xff]  }
  0x48   : > { %518 = vmatprep.mubr.bf16.mxu1 %v1873_v11  ;;  %v2107_v28 = vld [vmem:[%s2490_s3 + $0x84] ss:$8 sps:$4 sm:$0xff]   ;;  %v2113_v29 = vld [vmem:[%s2490_s3 + $0x80] ss:$8 sps:$4 sm:$0xff]   ;;  %v2119_v30 = vld [vmem:[%s2490_s3 + $0x94] ss:$8 sps:$4 sm:$0xff]  }
  0x49   : > { %v2125_v31 = vld [vmem:[%s2490_s3 + $0x90] ss:$8 sps:$4 sm:$0xff]   ;;  %v2131_v32 = vld [vmem:[%s2490_s3 + $0xa4] ss:$8 sps:$4 sm:$0xff]   ;;  %v2137_v33 = vld [vmem:[%s2490_s3 + $0xa0] ss:$8 sps:$4 sm:$0xff]  }
  0x4a   : > { %746 = vmatpush1.bf16.msra.mxu0 %v2029_v15  ;;  %v2143_v34 = vld [vmem:[%s2490_s3 + $0xb4] ss:$8 sps:$4 sm:$0xff]   ;;  %v2149_v35 = vld [vmem:[%s2490_s3 + $0xb0] ss:$8 sps:$4 sm:$0xff]   ;;  %v2155_v36 = vld [vmem:[%s2490_s3 + $0xc4] ss:$8 sps:$4 sm:$0xff]  }
  0x4b   : > { %747 = vmatprep.subr.bf16.mxu0 %v2035_v16  ;;  %v2161_v37 = vld [vmem:[%s2490_s3 + $0xc0] ss:$8 sps:$4 sm:$0xff]   ;;  %v2167_v38 = vld [vmem:[%s2490_s3 + $0xd4] ss:$8 sps:$4 sm:$0xff]   ;;  %v346_v39 = vld [vmem:[%s2493_s6 + $0x4] ss:$0 sm:$0xff] }
  0x4c   : > { %v2204_v50 = vld [vmem:[%s2490_s3 + $0xd0] ss:$8 sps:$4 sm:$0xff]   ;;  %v2211_v51 = vld [vmem:[%s2490_s3 + $0xe4] ss:$8 sps:$4 sm:$0xff]   ;;  %v2216_v52 = vld [vmem:[%s2490_s3 + $0xe0] ss:$8 sps:$4 sm:$0xff]  }
  0x4d   : > { %v2225_v53 = vld [vmem:[%s2490_s3 + $0xf4] ss:$8 sps:$4 sm:$0xff]   ;;  %v2230_v54 = vld [vmem:[%s2490_s3 + $0xf0] ss:$8 sps:$4 sm:$0xff]   ;;  %v460_v56 = vshrl.u32 %v459_v55, 7  ;;  %s2508_s27 = smov (!%p334_p9, %s1930_s27), 1 }
  0x4e   : > { %748 = vmatpush1.bf16.msra.mxu0 %v2041_v17  ;;  %v339_v58 = vld [vmem:[%s2493_s6] ss:$8 sm:$0x3]  ;;  %v1503_v62 = vld [vmem:[%s2493_s6 + $0x1] ss:$8 sm:$0x3] }
  0x4f   : > { %749 = vmatprep.subr.bf16.mxu0 %v2047_v18  ;;  %v2238_v57 = vsub.s32 0, %v460_v56  ;;  %v2243_v59 = vsub.s32 1, %v460_v56  ;;  %s1502_s17 = sshll.u32 %s2508_s27, 3 }
  0x50   : > { %s337_s26 = scalar_lea.vmem %s2494_s7, %s1502_s17 }
  0x51   : > { %v462_v60 = vrot.slane %v339_v58, %v2238_v57  ;;  %v466_v61 = vrot.slane %v339_v58, %v2243_v59  ;;  %v800_v2 = vrot.slane %v1503_v62, %v2238_v57  ;;  %v804_v5 = vrot.slane %v1503_v62, %v2243_v59 }
  0x52   : > { %750 = vmatpush1.bf16.msra.mxu0 %v2053_v19 }
  0x53   : > { %751 = vmatprep.subr.bf16.mxu0 %v2059_v20 }
  0x56   : > { %752 = vmatpush1.bf16.msra.mxu0 %v2065_v21 }
  0x57   : > { %753 = vmatprep.subr.bf16.mxu0 %v2071_v22 }
  0x5a   : > { %754 = vmatpush1.bf16.msra.mxu0 %v2077_v23 }
  0x5b   : > { %755 = vmatprep.subr.bf16.mxu0 %v2083_v24 }
  0x5e   : > { %756 = vmatpush1.bf16.msra.mxu0 %v2089_v25 }
  0x5f   : > { %757 = vmatprep.subr.bf16.mxu0 %v2095_v26 }
  0x62   : > { %758 = vmatpush1.bf16.msra.mxu0 %v2101_v27 }
  0x63   : > { %759 = vmatprep.subr.bf16.mxu0 %v2107_v28 }
  0x66   : > { %760 = vmatpush1.bf16.msra.mxu0 %v2113_v29 }
  0x67   : > { %761 = vmatprep.subr.bf16.mxu0 %v2119_v30 }
  0x6a   : > { %762 = vmatpush1.bf16.msra.mxu0 %v2125_v31 }
  0x6b   : > { %763 = vmatprep.subr.bf16.mxu0 %v2131_v32 }
  0x6e   : > { %764 = vmatpush1.bf16.msra.mxu0 %v2137_v33 }
  0x6f   : > { %765 = vmatprep.subr.bf16.mxu0 %v2143_v34 }
  0x72   : > { %766 = vmatpush1.bf16.msra.mxu0 %v2149_v35 }
  0x73   : > { %767 = vmatprep.subr.bf16.mxu0 %v2155_v36 }
  0x76   : > { %768 = vmatpush1.bf16.msra.mxu0 %v2161_v37 }
  0x77   : > { %769 = vmatprep.subr.bf16.mxu0 %v2167_v38 }
  0x7a   : > { %770 = vmatpush1.bf16.msra.mxu0 %v2204_v50 }
  0x7b   : > { %771 = vmatprep.subr.bf16.mxu0 %v2211_v51 }
  0x7e   : > { %772 = vmatpush1.bf16.msra.mxu0 %v2216_v52 }
  0x7f   : > { %773 = vmatprep.subr.bf16.mxu0 %v2225_v53 }
  0x82   : > { %774 = vmatpush1.bf16.msra.mxu0 %v2230_v54 }
  0x83   : > { %924 = vmatprep.subr.bf16.mxu0 %v2011_v12 }
 0x116   : > { %v1627_v40 = vpop.f32.mrb[0].mxu1 }
 0x117   : > { %v441_v41 = vadd.f32 %v1627_v40, %v346_v39  ;;  %v435_v42 = vpop.f32.mrb[1].mxu1 }
 0x118   : > { %v436_v43 = vadd.f32 %v435_v42, %v346_v39 }
 0x11a   : > { %v454_v44 = vpack.c.bf16 %v441_v41, %v436_v43  ;;  %v1630_v45 = vpop.f32.mrb[2].mxu1 }
 0x11b   : > { %v451_v46 = vadd.f32 %v1630_v45, %v346_v39  ;;  %v445_v47 = vpop.f32.mrb[3].mxu1 }
 0x11c   : > { %1515 = vmatmul.mubr.msk.bf16.vlgmr.msra.gmra.mrb[4].mxu1 %vm479_vm1, %v454_v44  ;;  %v446_v48 = vadd.f32 %v445_v47, %v346_v39 }
 0x11d   : > { %528 = vmatprep.mubr.bf16.mxu1 %v1873_v11  ;;  %880 = vmatpush1.bf16.msra.mxu1 %v2016_v13 }
 0x11e   : > { %v455_v49 = vpack.c.bf16 %v451_v46, %v446_v48  ;;  %881 = vmatprep.subr.bf16.mxu1 %v2021_v14 }
 0x121   : > { %882 = vmatpush1.bf16.msra.mxu1 %v2029_v15 }
 0x122   : > { %883 = vmatprep.subr.bf16.mxu1 %v2035_v16 }
 0x124   : > { %1516 = vmatmul.mubr.msk.bf16.gmra.mrb[8].mxu1 %vm479_vm1, %v455_v49 }
 0x125   : > { %884 = vmatpush1.bf16.msra.mxu1 %v2041_v17 }
 0x126   : > { %885 = vmatprep.subr.bf16.mxu1 %v2047_v18 }
 0x129   : > { %886 = vmatpush1.bf16.msra.mxu1 %v2053_v19 }
 0x12a   : > { %887 = vmatprep.subr.bf16.mxu1 %v2059_v20 }
 0x12d   : > { %888 = vmatpush1.bf16.msra.mxu1 %v2065_v21 }
 0x12e   : > { %889 = vmatprep.subr.bf16.mxu1 %v2071_v22 }
 0x131   : > { %890 = vmatpush1.bf16.msra.mxu1 %v2077_v23 }
 0x132   : > { %891 = vmatprep.subr.bf16.mxu1 %v2083_v24 }
 0x135   : > { %892 = vmatpush1.bf16.msra.mxu1 %v2089_v25 }
 0x136   : > { %893 = vmatprep.subr.bf16.mxu1 %v2095_v26 }
 0x139   : > { %894 = vmatpush1.bf16.msra.mxu1 %v2101_v27 }
 0x13a   : > { %895 = vmatprep.subr.bf16.mxu1 %v2107_v28 }
 0x13d   : > { %896 = vmatpush1.bf16.msra.mxu1 %v2113_v29 }
 0x13e   : > { %897 = vmatprep.subr.bf16.mxu1 %v2119_v30 }
 0x141   : > { %898 = vmatpush1.bf16.msra.mxu1 %v2125_v31 }
 0x142   : > { %899 = vmatprep.subr.bf16.mxu1 %v2131_v32 }
 0x145   : > { %900 = vmatpush1.bf16.msra.mxu1 %v2137_v33 }
 0x146   : > { %901 = vmatprep.subr.bf16.mxu1 %v2143_v34 }
 0x149   : > { %902 = vmatpush1.bf16.msra.mxu1 %v2149_v35 }
 0x14a   : > { %903 = vmatprep.subr.bf16.mxu1 %v2155_v36 }
 0x14d   : > { %904 = vmatpush1.bf16.msra.mxu1 %v2161_v37 }
 0x14e   : > { %905 = vmatprep.subr.bf16.mxu1 %v2167_v38 }
 0x151   : > { %906 = vmatpush1.bf16.msra.mxu1 %v2204_v50 }
 0x152   : > { %907 = vmatprep.subr.bf16.mxu1 %v2211_v51 }
 0x155   : > { %908 = vmatpush1.bf16.msra.mxu1 %v2216_v52 }
 0x156   : > { %909 = vmatprep.subr.bf16.mxu1 %v2225_v53 }
 0x159   : > { %910 = vmatpush1.bf16.msra.mxu1 %v2230_v54 }
 0x15a   : > { %969 = vmatprep.subr.bf16.mxu1 %v2011_v12 }
 0x1ef   : > { %v520_v63 = vpop.f32.mrb[4].mxu1 }
 0x1f0   : > { %v521_v0 = vadd.f32 %v520_v63, %v462_v60  ;;  %v522_v1 = vpop.f32.mrb[5].mxu1 }
 0x1f1   : > { %v523_v3 = vadd.f32 %v522_v1, %v466_v61  ;;  %v524_v4 = vpop.f32.mrb[6].mxu1 }
 0x1f2   : > { %v539_v6 = vmax.f32 %v521_v0, 0.0  ;;  %v525_v7 = vadd.f32 %v524_v4, %v462_v60  ;;  %v526_v8 = vpop.f32.mrb[7].mxu1 }
 0x1f3   : > { %v540_v9 = vmax.f32 %v523_v3, 0.0  ;;  %v527_v10 = vadd.f32 %v526_v8, %v466_v61 }
 0x1f4   : > { %v541_v11 = vmax.f32 %v525_v7, 0.0  ;;  %v807_v39 = vmul.f32 %v800_v2, %v539_v6 }
 0x1f5   : > { %v542_v40 = vmax.f32 %v527_v10, 0.0  ;;  %v808_v41 = vmul.f32 %v804_v5, %v540_v9 }
 0x1f6   : > { %v547_v42 = vpack.c.bf16 %v541_v11, %v539_v6  ;;  %v809_v43 = vmul.f32 %v800_v2, %v541_v11 }
 0x1f7   : > { %v810_v44 = vmul.f32 %v804_v5, %v542_v40  ;;  %v530_v45 = vpop.f32.mrb[8].mxu1  ;;  %v548_v46 = vpack.c.bf16 %v542_v40, %v540_v9  ;;  %v815_v47 = vadd.f32 %v808_v41, %v807_v39 }
 0x1f8   : > { %v531_v48 = vadd.f32 %v530_v45, %v462_v60  ;;  %v532_v49 = vpop.f32.mrb[9].mxu1 }
 0x1f9   : > { %v533_v55 = vadd.f32 %v532_v49, %v466_v61  ;;  %v534_v56 = vpop.f32.mrb[10].mxu1  ;;  %775 = vmatprep.mubr.bf16.mxu0 %v548_v46  ;;  %816 = vadd.xlane.f32.xlu0 %v815_v47  ;;  %v818_v58 = vadd.f32 %v810_v44, %v809_v43 }
 0x1fa   : > { %v543_v62 = vmax.f32 %v531_v48, 0.0  ;;  %v535_v63 = vadd.f32 %v534_v56, %v462_v60  ;;  %v536_v0 = vpop.f32.mrb[11].mxu1  ;;  %776 = vmatmul.mubr.bf16.vlgmr.msra.gmra.mrb[0].mxu0 %v547_v42 }
 0x1fb   : > { %v544_v1 = vmax.f32 %v533_v55, 0.0  ;;  %v537_v3 = vadd.f32 %v536_v0, %v466_v61  ;;  %925 = vmatpush1.bf16.msra.mxu0 %v2016_v13 }
 0x1fc   : > { %v545_v4 = vmax.f32 %v535_v63, 0.0  ;;  %v811_v6 = vmul.f32 %v800_v2, %v543_v62  ;;  %926 = vmatprep.subr.bf16.mxu0 %v2021_v14 }
 0x1fd   : > { %v546_v7 = vmax.f32 %v537_v3, 0.0  ;;  %819 = vadd.xlane.f32.xlu0 %v818_v58  ;;  %v812_v8 = vmul.f32 %v804_v5, %v544_v1 }
 0x1fe   : > { %v549_v9 = vpack.c.bf16 %v545_v4, %v543_v62  ;;  %v813_v10 = vmul.f32 %v800_v2, %v545_v4 }
 0x1ff   : > { %v550_v11 = vpack.c.bf16 %v546_v7, %v544_v1  ;;  %v814_v39 = vmul.f32 %v804_v5, %v546_v7  ;;  %v821_v40 = vadd.f32 %v812_v8, %v811_v6  ;;  %927 = vmatpush1.bf16.msra.mxu0 %v2029_v15 }
 0x200   : > { %928 = vmatprep.subr.bf16.mxu0 %v2035_v16 }
 0x201   : > { %822 = vadd.xlane.f32.xlu1 %v821_v40  ;;  %785 = vmatprep.mubr.bf16.mxu0 %v550_v11  ;;  %v824_v60 = vadd.f32 %v814_v39, %v813_v10 }
 0x202   : > { %786 = vmatmul.mubr.bf16.gmra.mrb[4].mxu0 %v549_v9 }
 0x203   : > { %929 = vmatpush1.bf16.msra.mxu0 %v2041_v17 }
 0x204   : > { %930 = vmatprep.subr.bf16.mxu0 %v2047_v18 }
 0x205   : > { %825 = vadd.xlane.f32.xlu1 %v824_v60 }
 0x207   : > { %931 = vmatpush1.bf16.msra.mxu0 %v2053_v19 }
 0x208   : > { %932 = vmatprep.subr.bf16.mxu0 %v2059_v20 }
 0x20b   : > { %933 = vmatpush1.bf16.msra.mxu0 %v2065_v21 }
 0x20c   : > { %934 = vmatprep.subr.bf16.mxu0 %v2071_v22 }
 0x20f   : > { %935 = vmatpush1.bf16.msra.mxu0 %v2077_v23 }
 0x210   : > { %936 = vmatprep.subr.bf16.mxu0 %v2083_v24 }
 0x213   : > { %937 = vmatpush1.bf16.msra.mxu0 %v2089_v25 }
 0x214   : > { %938 = vmatprep.subr.bf16.mxu0 %v2095_v26 }
 0x217   : > { %939 = vmatpush1.bf16.msra.mxu0 %v2101_v27 }
 0x218   : > { %940 = vmatprep.subr.bf16.mxu0 %v2107_v28 }
 0x21b   : > { %941 = vmatpush1.bf16.msra.mxu0 %v2113_v29 }
 0x21c   : > { %942 = vmatprep.subr.bf16.mxu0 %v2119_v30 }
 0x21f   : > { %943 = vmatpush1.bf16.msra.mxu0 %v2125_v31 }
 0x220   : > { %944 = vmatprep.subr.bf16.mxu0 %v2131_v32 }
 0x223   : > { %945 = vmatpush1.bf16.msra.mxu0 %v2137_v33 }
 0x224   : > { %946 = vmatprep.subr.bf16.mxu0 %v2143_v34 }
 0x227   : > { %947 = vmatpush1.bf16.msra.mxu0 %v2149_v35 }
 0x228   : > { %948 = vmatprep.subr.bf16.mxu0 %v2155_v36 }
 0x22b   : > { %949 = vmatpush1.bf16.msra.mxu0 %v2161_v37 }
 0x22c   : > { %950 = vmatprep.subr.bf16.mxu0 %v2167_v38 }
 0x22f   : > { %951 = vmatpush1.bf16.msra.mxu0 %v2204_v50 }
 0x230   : > { %952 = vmatprep.subr.bf16.mxu0 %v2211_v51 }
 0x233   : > { %953 = vmatpush1.bf16.msra.mxu0 %v2216_v52 }
 0x234   : > { %954 = vmatprep.subr.bf16.mxu0 %v2225_v53 }
 0x237   : > { %955 = vmatpush1.bf16.msra.mxu0 %v2230_v54 }
 0x238   : > { %1014 = vmatprep.subr.bf16.mxu0 %v2011_v12 }
 0x286   : > { %v817_v61 = vpop.xlane.xlu0 %816 }
 0x28a   : > { %v820_v5 = vpop.xlane.xlu0 %819 }
 0x28b   : > { %v827_v41 = vmax.f32 %v817_v61, %v820_v5 }
 0x28e   : > { %v823_v2 = vpop.xlane.xlu1 %822 }
 0x28f   : > { %v828_v43 = vmax.f32 %v827_v41, %v823_v2 }
 0x292   : > { %v826_v42 = vpop.xlane.xlu1 %825 }
 0x293   : > { %v829_v44 = vmax.f32 %v828_v43, %v826_v42  ;;  %v1504_v43 = vld [vmem:[%s2493_s6 + $0x2] ss:$8 sm:$0x3] }
 0x295   : > { %v830_v45 = vsub.f32 %v817_v61, %v829_v44  ;;  %v833_v46 = vsub.f32 %v820_v5, %v829_v44  ;;  %v836_v49 = vsub.f32 %v823_v2, %v829_v44  ;;  %v839_v56 = vsub.f32 %v826_v42, %v829_v44 }
 0x297   : > { %v831_v47 = vmul.f32 1.442695, %v830_v45  ;;  %v834_v48 = vmul.f32 1.442695, %v833_v46  ;;  %v837_v55 = vmul.f32 1.442695, %v836_v49 }
 0x298   : > { %v840_v58 = vmul.f32 1.442695, %v839_v56  ;;  %v2288_v56 = vrot.slane %v1504_v43, %v2238_v57 }
 0x299   : > { %1800 = vpow2.f32 %v831_v47 }
 0x29a   : > { %1802 = vpow2.f32 %v834_v48 }
 0x29b   : > { %1804 = vpow2.f32 %v837_v55 }
 0x29c   : > { %1806 = vpow2.f32 %v840_v58 }
 0x2a3   : > { %v1801_v62 = vpop.eup %1800 }
 0x2a4   : > { %v1803_v12 = vpop.eup %1802 }
 0x2a5   : > { %v842_v63 = vadd.f32 %v1803_v12, %v1801_v62  ;;  %v1805_v0 = vpop.eup %1804 }
 0x2a6   : > { %v1807_v3 = vpop.eup %1806 }
 0x2a7   : > { %v843_v1 = vadd.f32 %v1805_v0, %v842_v63 }
 0x2a9   : > { %v844_v6 = vadd.f32 %v1807_v3, %v843_v1 }
 0x2ab   : > { %1808 = vrcp.f32 %v844_v6 }
 0x2b5   : > { %v1809_v58 = vpop.eup %1808 }
 0x2cd   : > { %v777_v4 = vpop.f32.mrb[0].mxu0 }
 0x2ce   : > { %v779_v7 = vpop.f32.mrb[1].mxu0  ;;  %v846_v9 = vmul.f32 %v1801_v62, %v777_v4 }
 0x2cf   : > { %v781_v8 = vpop.f32.mrb[2].mxu0  ;;  %v847_v39 = vmul.f32 %v1801_v62, %v779_v7 }
 0x2d0   : > { %v848_v10 = vmul.f32 %v1803_v12, %v781_v8  ;;  %v783_v11 = vpop.f32.mrb[3].mxu0 }
 0x2d1   : > { %v849_v40 = vmul.f32 %v1803_v12, %v783_v11  ;;  %v2291_v12 = vrot.slane %v1504_v43, %v2243_v59  ;;  %v1787_v43 = vld [vmem:[#allocation3 + $0xb4] ss:$8 sps:$4 sm:$0xff]  }
 0x2d2   : > { %v850_v60 = vadd.f32 %v848_v10, %v846_v9 }
 0x2d3   : > { %v851_v61 = vadd.f32 %v849_v40, %v847_v39 }
 0x2d5   : > { %v787_v2 = vpop.f32.mrb[4].mxu0 }
 0x2d6   : > { %v852_v5 = vmul.f32 %v1805_v0, %v787_v2  ;;  %v789_v41 = vpop.f32.mrb[5].mxu0 }
 0x2d7   : > { %v853_v42 = vmul.f32 %v1805_v0, %v789_v41  ;;  %v791_v44 = vpop.f32.mrb[6].mxu0 }
 0x2d8   : > { %v854_v45 = vadd.f32 %v852_v5, %v850_v60  ;;  %v856_v46 = vmul.f32 %v1807_v3, %v791_v44  ;;  %v793_v47 = vpop.f32.mrb[7].mxu0  ;;  %v1785_v44 = vld [vmem:[#allocation3 + $0xb0] ss:$8 sps:$4 sm:$0xff]  }
 0x2d9   : > { %v855_v48 = vadd.f32 %v853_v42, %v851_v61  ;;  %v857_v49 = vmul.f32 %v1807_v3, %v793_v47  ;;  %v1782_v42 = vld [vmem:[#allocation3 + $0xa0] ss:$8 sps:$4 sm:$0xff]   ;;  %v1793_v47 = vld [vmem:[#allocation3 + $0xd4] ss:$8 sps:$4 sm:$0xff]  }
 0x2da   : > { %v858_v55 = vadd.f32 %v856_v46, %v854_v45  ;;  %v1790_v45 = vld [vmem:[#allocation3 + $0xc4] ss:$8 sps:$4 sm:$0xff]   ;;  %v1788_v46 = vld [vmem:[#allocation3 + $0xc0] ss:$8 sps:$4 sm:$0xff]  }
 0x2db   : > { %v859_v62 = vadd.f32 %v857_v49, %v855_v48  ;;  %v1791_v48 = vld [vmem:[#allocation3 + $0xd0] ss:$8 sps:$4 sm:$0xff]  }
 0x2dc   : > { %v860_v63 = vmul.f32 %v1809_v58, %v858_v55 }
 0x2dd   : > { %v861_v0 = vmul.f32 %v1809_v58, %v859_v62 }
 0x2de   : > { %v873_v1 = vadd.f32 %v2288_v56, %v860_v63 }
 0x2df   : > { %v874_v4 = vadd.f32 %v2291_v12, %v861_v0 }
 0x2e0   : > { %v875_v6 = vmax.f32 %v873_v1, 0.0 }
 0x2e1   : > { %v876_v7 = vmax.f32 %v874_v4, 0.0 }
 0x2e2   : > { %v877_v9 = vpack.c.bf16 %v875_v6, %v875_v6 }
 0x2e3   : > { %v878_v8 = vpack.c.bf16 %v876_v7, %v876_v7 }
 0x2e5   : > { %911 = vmatprep.mubr.bf16.mxu1 %v878_v8  ;;  %v1796_v8 = vld [vmem:[#allocation3 + $0xe4] ss:$8 sps:$4 sm:$0xff]  }
 0x2e6   : > { %912 = vmatmul.mubr.bf16.vlgmr.msra.gmra.mrb[12].mxu1 %v877_v9  ;;  %v1794_v9 = vld [vmem:[#allocation3 + $0xe0] ss:$8 sps:$4 sm:$0xff]  }
 0x2e7   : > { %970 = vmatpush1.bf16.msra.mxu1 %v2016_v13 }
 0x2e8   : > { %971 = vmatprep.subr.bf16.mxu1 %v2021_v14 }
 0x2eb   : > { %972 = vmatpush1.bf16.msra.mxu1 %v2029_v15 }
 0x2ec   : > { %973 = vmatprep.subr.bf16.mxu1 %v2035_v16 }
 0x2ef   : > { %974 = vmatpush1.bf16.msra.mxu1 %v2041_v17 }
 0x2f0   : > { %975 = vmatprep.subr.bf16.mxu1 %v2047_v18 }
 0x2f3   : > { %976 = vmatpush1.bf16.msra.mxu1 %v2053_v19 }
 0x2f4   : > { %977 = vmatprep.subr.bf16.mxu1 %v2059_v20 }
 0x2f7   : > { %978 = vmatpush1.bf16.msra.mxu1 %v2065_v21 }
 0x2f8   : > { %979 = vmatprep.subr.bf16.mxu1 %v2071_v22 }
 0x2fb   : > { %980 = vmatpush1.bf16.msra.mxu1 %v2077_v23 }
 0x2fc   : > { %981 = vmatprep.subr.bf16.mxu1 %v2083_v24 }
 0x2ff   : > { %982 = vmatpush1.bf16.msra.mxu1 %v2089_v25 }
 0x300   : > { %983 = vmatprep.subr.bf16.mxu1 %v2095_v26 }
 0x303   : > { %984 = vmatpush1.bf16.msra.mxu1 %v2101_v27 }
 0x304   : > { %985 = vmatprep.subr.bf16.mxu1 %v2107_v28 }
 0x307   : > { %986 = vmatpush1.bf16.msra.mxu1 %v2113_v29 }
 0x308   : > { %987 = vmatprep.subr.bf16.mxu1 %v2119_v30 }
 0x30b   : > { %988 = vmatpush1.bf16.msra.mxu1 %v2125_v31 }
 0x30c   : > { %989 = vmatprep.subr.bf16.mxu1 %v2131_v32 }
 0x30f   : > { %990 = vmatpush1.bf16.msra.mxu1 %v2137_v33 }
 0x310   : > { %991 = vmatprep.subr.bf16.mxu1 %v2143_v34 }
 0x313   : > { %992 = vmatpush1.bf16.msra.mxu1 %v2149_v35 }
 0x314   : > { %993 = vmatprep.subr.bf16.mxu1 %v2155_v36 }
 0x317   : > { %994 = vmatpush1.bf16.msra.mxu1 %v2161_v37 }
 0x318   : > { %995 = vmatprep.subr.bf16.mxu1 %v2167_v38 }
 0x31b   : > { %996 = vmatpush1.bf16.msra.mxu1 %v2204_v50 }
 0x31c   : > { %997 = vmatprep.subr.bf16.mxu1 %v2211_v51 }
 0x31f   : > { %998 = vmatpush1.bf16.msra.mxu1 %v2216_v52 }
 0x320   : > { %999 = vmatprep.subr.bf16.mxu1 %v2225_v53 }
 0x323   : > { %1000 = vmatpush1.bf16.msra.mxu1 %v2230_v54 }
 0x3b9   : > { %v913_v3 = vpop.f32.mrb[12].mxu1 }
 0x3ba   : > { %v914_v10 = vadd.f32 %v913_v3, %v2288_v56  ;;  %v915_v11 = vpop.f32.mrb[13].mxu1  ;;  %v1797_v3 = vld [vmem:[#allocation3 + $0xf0] ss:$8 sps:$4 sm:$0xff]  }
 0x3bb   : > { %v916_v39 = vadd.f32 %v915_v11, %v2291_v12  ;;  %v917_v40 = vpop.f32.mrb[14].mxu1  ;;  %v1321_v11 = vld [vmem:[%s2492_s5 + $0x80] sm:$0xff] }
 0x3bc   : > { %v920_v60 = vmax.f32 %v914_v10, 0.0  ;;  %v918_v61 = vpop.f32.mrb[15].mxu1  ;;  %v1799_v10 = vld [vmem:[#allocation3 + $0xf4] ss:$8 sps:$4 sm:$0xff]   ;;  %v1305_v40 = vld [vmem:[%s2492_s5] sm:$0xff] }
 0x3bd   : > { %v921_v2 = vmax.f32 %v916_v39, 0.0  ;;  %v1322_v39 = vld [vmem:[%s2492_s5 + $0x88] sm:$0xff] }
 0x3be   : > { %v922_v41 = vpack.c.bf16 %v920_v60, %v920_v60  ;;  %v1631_v60 = vpack.c.bf16 %v1322_v39, %v1321_v11  ;;  %v1306_v61 = vld [vmem:[%s2492_s5 + $0x8] sm:$0xff] }
 0x3bf   : > { %v923_v5 = vpack.c.bf16 %v921_v2, %v921_v2  ;;  %v1323_v2 = vld [vmem:[%s2492_s5 + $0x90] sm:$0xff] }
 0x3c1   : > { %956 = vmatprep.mubr.bf16.mxu0 %v923_v5  ;;  %v1324_v5 = vld [vmem:[%s2492_s5 + $0x98] sm:$0xff] }
 0x3c2   : > { %957 = vmatmul.mubr.bf16.vlgmr.msra.gmra.mrb[8].mxu0 %v922_v41  ;;  %v1633_v41 = vpack.c.bf16 %v1306_v61, %v1305_v40 }
 0x3c3   : > { %1015 = vmatpush1.bf16.msra.mxu0 %v2016_v13 }
 0x3c4   : > { %1016 = vmatprep.subr.bf16.mxu0 %v2021_v14 }
 0x3c7   : > { %1017 = vmatpush1.bf16.msra.mxu0 %v2029_v15 }
 0x3c8   : > { %1018 = vmatprep.subr.bf16.mxu0 %v2035_v16 }
 0x3cb   : > { %1019 = vmatpush1.bf16.msra.mxu0 %v2041_v17 }
 0x3cc   : > { %1020 = vmatprep.subr.bf16.mxu0 %v2047_v18 }
 0x3cf   : > { %1021 = vmatpush1.bf16.msra.mxu0 %v2053_v19 }
 0x3d0   : > { %1022 = vmatprep.subr.bf16.mxu0 %v2059_v20 }
 0x3d3   : > { %1023 = vmatpush1.bf16.msra.mxu0 %v2065_v21 }
 0x3d4   : > { %1024 = vmatprep.subr.bf16.mxu0 %v2071_v22 }
 0x3d7   : > { %1025 = vmatpush1.bf16.msra.mxu0 %v2077_v23  ;;  %v1752_v23 = vld [vmem:[#allocation3] ss:$8 sps:$4 sm:$0xff]  }
 0x3d8   : > { %1026 = vmatprep.subr.bf16.mxu0 %v2083_v24  ;;  %v1754_v24 = vld [vmem:[#allocation3 + $0x4] ss:$8 sps:$4 sm:$0xff]  }
 0x3d9   : > { %1262 = vmatprep.subr.bf16.mxu1 %v1754_v24 }
 0x3db   : > { %1027 = vmatpush1.bf16.msra.mxu0 %v2089_v25  ;;  %v1757_v25 = vld [vmem:[#allocation3 + $0x14] ss:$8 sps:$4 sm:$0xff]  }
 0x3dc   : > { %1028 = vmatprep.subr.bf16.mxu0 %v2095_v26  ;;  %v1755_v26 = vld [vmem:[#allocation3 + $0x10] ss:$8 sps:$4 sm:$0xff]  }
 0x3df   : > { %1029 = vmatpush1.bf16.msra.mxu0 %v2101_v27  ;;  %v1760_v27 = vld [vmem:[#allocation3 + $0x24] ss:$8 sps:$4 sm:$0xff]  }
 0x3e0   : > { %1030 = vmatprep.subr.bf16.mxu0 %v2107_v28  ;;  %v1758_v28 = vld [vmem:[#allocation3 + $0x20] ss:$8 sps:$4 sm:$0xff]  }
 0x3e3   : > { %1031 = vmatpush1.bf16.msra.mxu0 %v2113_v29  ;;  %v1763_v29 = vld [vmem:[#allocation3 + $0x34] ss:$8 sps:$4 sm:$0xff]  }
 0x3e4   : > { %1032 = vmatprep.subr.bf16.mxu0 %v2119_v30  ;;  %v1761_v30 = vld [vmem:[#allocation3 + $0x30] ss:$8 sps:$4 sm:$0xff]  }
 0x3e7   : > { %1033 = vmatpush1.bf16.msra.mxu0 %v2125_v31  ;;  %v1766_v31 = vld [vmem:[#allocation3 + $0x44] ss:$8 sps:$4 sm:$0xff]  }
 0x3e8   : > { %1034 = vmatprep.subr.bf16.mxu0 %v2131_v32  ;;  %v1764_v32 = vld [vmem:[#allocation3 + $0x40] ss:$8 sps:$4 sm:$0xff]  }
 0x3eb   : > { %1035 = vmatpush1.bf16.msra.mxu0 %v2137_v33  ;;  %v1769_v33 = vld [vmem:[#allocation3 + $0x54] ss:$8 sps:$4 sm:$0xff]  }
 0x3ec   : > { %1036 = vmatprep.subr.bf16.mxu0 %v2143_v34  ;;  %v1767_v34 = vld [vmem:[#allocation3 + $0x50] ss:$8 sps:$4 sm:$0xff]  }
 0x3ef   : > { %1037 = vmatpush1.bf16.msra.mxu0 %v2149_v35  ;;  %v1772_v35 = vld [vmem:[#allocation3 + $0x64] ss:$8 sps:$4 sm:$0xff]  }
 0x3f0   : > { %1038 = vmatprep.subr.bf16.mxu0 %v2155_v36  ;;  %v1770_v36 = vld [vmem:[#allocation3 + $0x60] ss:$8 sps:$4 sm:$0xff]  }
 0x3f3   : > { %1039 = vmatpush1.bf16.msra.mxu0 %v2161_v37  ;;  %v1775_v37 = vld [vmem:[#allocation3 + $0x74] ss:$8 sps:$4 sm:$0xff]  }
 0x3f4   : > { %1040 = vmatprep.subr.bf16.mxu0 %v2167_v38  ;;  %v1773_v38 = vld [vmem:[#allocation3 + $0x70] ss:$8 sps:$4 sm:$0xff]  }
 0x3f7   : > { %1041 = vmatpush1.bf16.msra.mxu0 %v2204_v50  ;;  %v1778_v50 = vld [vmem:[#allocation3 + $0x84] ss:$8 sps:$4 sm:$0xff]  }
 0x3f8   : > { %1042 = vmatprep.subr.bf16.mxu0 %v2211_v51  ;;  %v1776_v51 = vld [vmem:[#allocation3 + $0x80] ss:$8 sps:$4 sm:$0xff]  }
 0x3fb   : > { %1043 = vmatpush1.bf16.msra.mxu0 %v2216_v52  ;;  %v1781_v52 = vld [vmem:[#allocation3 + $0x94] ss:$8 sps:$4 sm:$0xff]  }
 0x3fc   : > { %1044 = vmatprep.subr.bf16.mxu0 %v2225_v53  ;;  %v1779_v53 = vld [vmem:[#allocation3 + $0x90] ss:$8 sps:$4 sm:$0xff]  }
 0x3ff   : > { %1045 = vmatpush1.bf16.msra.mxu0 %v2230_v54  ;;  %v1784_v54 = vld [vmem:[#allocation3 + $0xa4] ss:$8 sps:$4 sm:$0xff]  }
 0x400   : > { %1632 = vmatprep.subr.bf16.mxu0 %v1631_v60 }
 0x495   : > { %v958_v13 = vpop.f32.mrb[8].mxu0 }
 0x496   : > { %v959_v14 = vadd.f32 %v958_v13, %v2288_v56  ;;  %v960_v15 = vpop.f32.mrb[9].mxu0  ;;  %v1635_v13 = vpack.c.bf16 %v1324_v5, %v1323_v2 }
 0x497   : > { %v961_v16 = vadd.f32 %v960_v15, %v2291_v12  ;;  %v962_v17 = vpop.f32.mrb[10].mxu0  ;;  %v1308_v15 = vld [vmem:[%s2492_s5 + $0x18] sm:$0xff] }
 0x498   : > { %v965_v18 = vmax.f32 %v959_v14, 0.0  ;;  %v963_v19 = vpop.f32.mrb[11].mxu0  ;;  %v1307_v14 = vld [vmem:[%s2492_s5 + $0x10] sm:$0xff]  ;;  %v1326_v17 = vld [vmem:[%s2492_s5 + $0xa8] sm:$0xff] }
 0x499   : > { %v966_v20 = vmax.f32 %v961_v16, 0.0  ;;  %v1325_v16 = vld [vmem:[%s2492_s5 + $0xa0] sm:$0xff] }
 0x49a   : > { %v967_v22 = vpack.c.bf16 %v965_v18, %v965_v18  ;;  %v1637_v18 = vpack.c.bf16 %v1308_v15, %v1307_v14  ;;  %v1639_v19 = vpack.c.bf16 %v1326_v17, %v1325_v16 }
 0x49b   : > { %v968_v21 = vpack.c.bf16 %v966_v20, %v966_v20  ;;  %v1309_v20 = vld [vmem:[%s2492_s5 + $0x20] sm:$0xff] }
 0x49d   : > { %1001 = vmatprep.mubr.bf16.mxu1 %v968_v21  ;;  %v1310_v21 = vld [vmem:[%s2492_s5 + $0x28] sm:$0xff] }
 0x49e   : > { %1002 = vmatmul.mubr.bf16.vlgmr.msra.gmra.mrb[16].mxu1 %v967_v22  ;;  %v1327_v22 = vld [vmem:[%s2492_s5 + $0xb0] sm:$0xff]  ;;  %v1641_v24 = vpack.c.bf16 %v1310_v21, %v1309_v20 }
 0x49f   : > { %1263 = vmatpush1.bf16.msra.mxu1 %v1752_v23  ;;  %v1328_v23 = vld [vmem:[%s2492_s5 + $0xb8] sm:$0xff] }
 0x4a0   : > { %1264 = vmatprep.subr.bf16.mxu1 %v1757_v25  ;;  %v1643_v25 = vpack.c.bf16 %v1328_v23, %v1327_v22 }
 0x4a3   : > { %1265 = vmatpush1.bf16.msra.mxu1 %v1755_v26  ;;  %v1311_v26 = vld [vmem:[%s2492_s5 + $0x30] sm:$0xff] }
 0x4a4   : > { %1266 = vmatprep.subr.bf16.mxu1 %v1760_v27  ;;  %v1312_v27 = vld [vmem:[%s2492_s5 + $0x38] sm:$0xff] }
 0x4a7   : > { %1267 = vmatpush1.bf16.msra.mxu1 %v1758_v28  ;;  %v1329_v28 = vld [vmem:[%s2492_s5 + $0xc0] sm:$0xff] }
 0x4a8   : > { %1268 = vmatprep.subr.bf16.mxu1 %v1763_v29  ;;  %v1330_v29 = vld [vmem:[%s2492_s5 + $0xc8] sm:$0xff] }
 0x4ab   : > { %1269 = vmatpush1.bf16.msra.mxu1 %v1761_v30  ;;  %v1645_v30 = vpack.c.bf16 %v1312_v27, %v1311_v26 }
 0x4ac   : > { %1270 = vmatprep.subr.bf16.mxu1 %v1766_v31  ;;  %v1647_v31 = vpack.c.bf16 %v1330_v29, %v1329_v28 }
 0x4af   : > { %1271 = vmatpush1.bf16.msra.mxu1 %v1764_v32  ;;  %v1313_v32 = vld [vmem:[%s2492_s5 + $0x40] sm:$0xff] }
 0x4b0   : > { %1272 = vmatprep.subr.bf16.mxu1 %v1769_v33  ;;  %v1314_v33 = vld [vmem:[%s2492_s5 + $0x48] sm:$0xff] }
 0x4b3   : > { %1273 = vmatpush1.bf16.msra.mxu1 %v1767_v34  ;;  %v1331_v34 = vld [vmem:[%s2492_s5 + $0xd0] sm:$0xff] }
 0x4b4   : > { %1274 = vmatprep.subr.bf16.mxu1 %v1772_v35  ;;  %v1332_v35 = vld [vmem:[%s2492_s5 + $0xd8] sm:$0xff] }
 0x4b7   : > { %1275 = vmatpush1.bf16.msra.mxu1 %v1770_v36  ;;  %v1649_v36 = vpack.c.bf16 %v1314_v33, %v1313_v32 }
 0x4b8   : > { %1276 = vmatprep.subr.bf16.mxu1 %v1775_v37  ;;  %v1651_v37 = vpack.c.bf16 %v1332_v35, %v1331_v34 }
 0x4bb   : > { %1277 = vmatpush1.bf16.msra.mxu1 %v1773_v38  ;;  %v1315_v38 = vld [vmem:[%s2492_s5 + $0x50] sm:$0xff] }
 0x4bc   : > { %1278 = vmatprep.subr.bf16.mxu1 %v1778_v50  ;;  %v1316_v50 = vld [vmem:[%s2492_s5 + $0x58] sm:$0xff] }
 0x4bf   : > { %1279 = vmatpush1.bf16.msra.mxu1 %v1776_v51  ;;  %v1333_v51 = vld [vmem:[%s2492_s5 + $0xe0] sm:$0xff] }
 0x4c0   : > { %1280 = vmatprep.subr.bf16.mxu1 %v1781_v52  ;;  %v1334_v52 = vld [vmem:[%s2492_s5 + $0xe8] sm:$0xff] }
 0x4c3   : > { %1281 = vmatpush1.bf16.msra.mxu1 %v1779_v53  ;;  %v1653_v53 = vpack.c.bf16 %v1316_v50, %v1315_v38 }
 0x4c4   : > { %1282 = vmatprep.subr.bf16.mxu1 %v1784_v54  ;;  %v1655_v54 = vpack.c.bf16 %v1334_v52, %v1333_v51 }
 0x4c7   : > { %1283 = vmatpush1.bf16.msra.mxu1 %v1782_v42 }
 0x4c8   : > { %1284 = vmatprep.subr.bf16.mxu1 %v1787_v43 }
 0x4cb   : > { %1285 = vmatpush1.bf16.msra.mxu1 %v1785_v44 }
 0x4cc   : > { %1286 = vmatprep.subr.bf16.mxu1 %v1790_v45 }
 0x4cf   : > { %1287 = vmatpush1.bf16.msra.mxu1 %v1788_v46 }
 0x4d0   : > { %1288 = vmatprep.subr.bf16.mxu1 %v1793_v47 }
 0x4d3   : > { %1289 = vmatpush1.bf16.msra.mxu1 %v1791_v48 }
 0x4d4   : > { %1290 = vmatprep.subr.bf16.mxu1 %v1796_v8  ;;  %v1505_v8 = vld [vmem:[%s2493_s6 + $0x3] ss:$8 sm:$0x3] }
 0x4d7   : > { %1291 = vmatpush1.bf16.msra.mxu1 %v1794_v9  ;;  %v1095_v9 = vrot.slane %v1505_v8, %v2238_v57 }
 0x4d8   : > { %1292 = vmatprep.subr.bf16.mxu1 %v1799_v10 }
 0x4db   : > { %1293 = vmatpush1.bf16.msra.mxu1 %v1797_v3  ;;  %v1099_v3 = vrot.slane %v1505_v8, %v2243_v59 }
 0x571   : > { %v1003_v49 = vpop.f32.mrb[16].mxu1 }
 0x572   : > { %v1004_v55 = vadd.f32 %v1003_v49, %v2288_v56  ;;  %v1005_v58 = vpop.f32.mrb[17].mxu1 }
 0x573   : > { %v1006_v62 = vadd.f32 %v1005_v58, %v2291_v12  ;;  %v1007_v63 = vpop.f32.mrb[18].mxu1 }
 0x574   : > { %v1010_v0 = vmax.f32 %v1004_v55, 0.0  ;;  %v1008_v1 = vpop.f32.mrb[19].mxu1  ;;  %v1318_v63 = vld [vmem:[%s2492_s5 + $0x68] sm:$0xff] }
 0x575   : > { %v1011_v4 = vmax.f32 %v1006_v62, 0.0  ;;  %v1317_v62 = vld [vmem:[%s2492_s5 + $0x60] sm:$0xff] }
 0x576   : > { %v1012_v7 = vpack.c.bf16 %v1010_v0, %v1010_v0  ;;  %v1336_v0 = vld [vmem:[%s2492_s5 + $0xf8] sm:$0xff] }
 0x577   : > { %v1013_v6 = vpack.c.bf16 %v1011_v4, %v1011_v4  ;;  %v1319_v4 = vld [vmem:[%s2492_s5 + $0x70] sm:$0xff] }
 0x579   : > { %1046 = vmatprep.mubr.bf16.mxu0 %v1013_v6  ;;  %v1320_v6 = vld [vmem:[%s2492_s5 + $0x78] sm:$0xff] }
 0x57a   : > { %1047 = vmatmul.mubr.bf16.vlgmr.msra.gmra.mrb[12].mxu0 %v1012_v7  ;;  %v1661_v7 = vpack.c.bf16 %v1320_v6, %v1319_v4 }
 0x57b   : > { %1634 = vmatpush3.bf16.msra.mxu0 %v1633_v41 }
 0x57c   : > { %1636 = vmatprep.subr.bf16.mxu0 %v1635_v13  ;;  %v347_v13 = vld [vmem:[%s2493_s6 + $0x5] ss:$0 sm:$0xff] }
 0x57f   : > { %1638 = vmatpush3.bf16.msra.mxu0 %v1637_v18 }
 0x580   : > { %1640 = vmatprep.subr.bf16.mxu0 %v1639_v19 }
 0x583   : > { %1642 = vmatpush3.bf16.msra.mxu0 %v1641_v24 }
 0x584   : > { %1644 = vmatprep.subr.bf16.mxu0 %v1643_v25 }
 0x587   : > { %1646 = vmatpush3.bf16.msra.mxu0 %v1645_v30 }
 0x588   : > { %1648 = vmatprep.subr.bf16.mxu0 %v1647_v31 }
 0x58b   : > { %1650 = vmatpush3.bf16.msra.mxu0 %v1649_v36 }
 0x58c   : > { %1652 = vmatprep.subr.bf16.mxu0 %v1651_v37 }
 0x58f   : > { %1654 = vmatpush3.bf16.msra.mxu0 %v1653_v53 }
 0x590   : > { %1656 = vmatprep.subr.bf16.mxu0 %v1655_v54 }
 0x64d   : > { %v1048_v42 = vpop.f32.mrb[12].mxu0 }
 0x64e   : > { %v1049_v43 = vadd.f32 %v1048_v42, %v2288_v56  ;;  %v1050_v44 = vpop.f32.mrb[13].mxu0  ;;  %v1657_v56 = vpack.c.bf16 %v1318_v63, %v1317_v62 }
 0x64f   : > { %v1051_v45 = vadd.f32 %v1050_v44, %v2291_v12  ;;  %v1052_v46 = vpop.f32.mrb[14].mxu0  ;;  %v1335_v12 = vld [vmem:[%s2492_s5 + $0xf0] sm:$0xff] }
 0x650   : > { %v1055_v47 = vmax.f32 %v1049_v43, 0.0  ;;  %v1053_v48 = vpop.f32.mrb[15].mxu0  ;;  %1658 = vmatpush3.bf16.msra.mxu0 %v1657_v56  ;;  %v1659_v1 = vpack.c.bf16 %v1336_v0, %v1335_v12 }
 0x651   : > { %v1056_v49 = vmax.f32 %v1051_v45, 0.0 }
 0x652   : > { %v1057_v58 = vpack.c.bf16 %v1055_v47, %v1055_v47  ;;  %1660 = vmatprep.subr.bf16.mxu0 %v1659_v1 }
 0x653   : > { %v1058_v55 = vpack.c.bf16 %v1056_v49, %v1056_v49 }
 0x654   : > { %1662 = vmatpush3.bf16.msra.mxu0 %v1661_v7 }
 0x655   : > { %1294 = vmatprep.mubr.bf16.mxu1 %v1058_v55 }
 0x656   : > { %1295 = vmatmul.mubr.bf16.vlgmr.msra.gmra.mrb[20].mxu1 %v1057_v58 }
 0x729   : > { %v1296_v10 = vpop.f32.mrb[20].mxu1 }
 0x72a   : > { %v1297_v11 = vadd.f32 %v1296_v10, %v1095_v9  ;;  %v1298_v39 = vpop.f32.mrb[21].mxu1 }
 0x72b   : > { %v1299_v40 = vadd.f32 %v1298_v39, %v1099_v3  ;;  %v1300_v60 = vpop.f32.mrb[22].mxu1 }
 0x72c   : > { %v1301_v61 = vpop.f32.mrb[23].mxu1  ;;  %v1303_v5 = vmax.f32 %v1297_v11, 0.0 }
 0x72d   : > { %v1304_v2 = vmax.f32 %v1299_v40, 0.0 }
 0x72f   : > { %1401 = vmatprep.mubr.f32.mxu0 %v1304_v2 }
 0x730   : > { %1402 = vmatmul.mubr.f32.vlgmr.msra.gmra.mrb[16].mxu0 %v1303_v5 }
 0x803   : > { %v1620_v41 = vpop.f32.mrb[16].mxu0 }
 0x804   : > { %v1621_v57 = vpop.f32.mrb[17].mxu0 }
 0x805   : > { %v1622_v14 = vadd.f32 %v1621_v57, %v1620_v41 }
 0x807   : > { %v1404_v59 = vadd.f32 %v1622_v14, %v347_v13 }
 0x809   : > { %v1407_v15 = vsel %vm356_vm0, %v1404_v59, -inf }
 0x80a   : > { %1408 = vmax.xlane.f32.xlu0 %v1407_v15 }
 0x897   : > { %v1409_v16 = vpop.xlane.xlu0 %1408 }
 0x898   : > { %v1410_v17 = vsub.f32 %v1404_v59, %v1409_v16 }
 0x89a   : > { %v1411_v18 = vmul.f32 1.442695, %v1410_v17 }
 0x89c   : > { %1810 = vpow2.f32 %v1411_v18 }
 0x8a6   : > { %v1811_v19 = vpop.eup %1810 }
 0x8a7   : > { %v1413_v20 = vsel %vm356_vm0, %v1811_v19, 0.0 }
 0x8a8   : > { %1414 = vadd.xlane.f32.xlu1 %v1413_v20 }
 0x935   : > { %v1415_v21 = vpop.xlane.xlu1 %1414 }
 0x936   : > { %1812 = vlog2.f32 %v1415_v21 }
 0x940   : > { %v1813_v22 = vpop.eup %1812 }
 0x941   : > { %v1417_v23 = vmul.f32 0.6931472, %v1813_v22 }
 0x943   : > { %v1418_v24 = vadd.f32 %v1417_v23, %v1409_v16 }
 0x945   : > { %v1419_v25 = vsub.f32 %v1404_v59, %v1418_v24 }
 0x947   : > { %1420 = vst.msk [vmem:[%s337_s26] sm:$0xff] %vm356_vm0, %v1419_v25 }
 0x948 PF: > { %p15_p11 = scmp.ge.s32.totalorder %s1933_s28, 4   ;;  %s2504_s24 = smov %s1864_s25 }
 0x949   : > { %s2505_s25 = smov %s1943_s8  ;;  %s2506_s26 = smov %s1933_s28 }
 0x94a   :  { %17 = sbr.rel (!%p15_p11) target bundleno = 2 (0x2), region = 132 }
 0x951   :  { %1440 = vsyncpa [#allocation4], 1 }
 0x952   :  { %1442 = vsyncpa [#allocation4 + $0x1], 1 }

</bundles_post_ra>
